<compile_context>
chip_gen: v7x
topology: tpu7x:2x2x1
jax: 0.10.0
libtpu: 0.0.40
codegen_flags: <defaults>
</compile_context>

<pallas_src>
import jax
import jax.numpy as jnp
from jax.experimental import pallas as pl
from jax.experimental.pallas import tpu as pltpu

_LN_EPS = 1e-5


def _layernorm(x, w, b):
    # PyTorch LayerNorm over the last dim, biased variance, eps=1e-5.
    mu = jnp.mean(x, axis=-1, keepdims=True)
    var = jnp.mean(jnp.square(x - mu), axis=-1, keepdims=True)
    return (x - mu) * jax.lax.rsqrt(var + _LN_EPS) * w + b


def _gelu(x):
    # Exact GELU (erf form) to match torch.nn.GELU() default.
    return 0.5 * x * (1.0 + jax.lax.erf(x * 0.7071067811865476))


def _mm(a, w, bias):
    # bf16 MXU matmul with f32 accumulation, then f32 bias add.
    return jnp.dot(a.astype(jnp.bfloat16), w.astype(jnp.bfloat16),
                   preferred_element_type=jnp.float32) + bias


def _mixer_kernel(
    x_ref,
    cn_w_ref, cn_b_ref, c1w_ref, c1b_ref, c2w_ref, c2b_ref,
    rn_w_ref, rn_b_ref, r1w_ref, r1b_ref, r2w_ref, r2b_ref,
    o_ref,
):
    bt, k, d = x_ref.shape
    x = x_ref[...].astype(jnp.float32)                     # (Bt, K, D)

    # ---- column (token) mixing: MLP over the K axis ----
    # One batched minor-dim transpose for the whole block, then flatten the
    # leading dims so the matmuls are big 2-D MXU matmuls (M = Bt*D).
    xt = jnp.transpose(x, (0, 2, 1)).reshape(bt * d, k)    # (Bt*D, K)
    h = _layernorm(xt, cn_w_ref[...], cn_b_ref[...])
    h = _gelu(_mm(h, c1w_ref[...], c1b_ref[...]))          # (Bt*D, Hc)
    h = _mm(h, c2w_ref[...], c2b_ref[...])                 # (Bt*D, K)
    h = jnp.transpose(h.reshape(bt, d, k), (0, 2, 1))      # back to (Bt, K, D)
    x = x + h                                              # residual

    # ---- row (channel) mixing: MLP over the D axis (no transpose needed) ----
    x2 = x.reshape(bt * k, d)                              # (Bt*K, D)
    h = _layernorm(x2, rn_w_ref[...], rn_b_ref[...])
    h = _gelu(_mm(h, r1w_ref[...], r1b_ref[...]))          # (Bt*K, Hr)
    h = _mm(h, r2w_ref[...], r2b_ref[...])                 # (Bt*K, D)
    x2 = x2 + h                                            # residual

    o_ref[...] = x2.reshape(bt, k, d).astype(o_ref.dtype)


def mlp_mixer_forward(x, params, *, block_b=128):
    """x: (B, K, D) float32.  params: dict produced by init_params."""
    B, K, D = x.shape
    Hc = params["c1w"].shape[1]
    Hr = params["r1w"].shape[1]

    bt = min(block_b, B)
    b_pad = pl.cdiv(B, bt) * bt
    if b_pad != B:
        x = jnp.pad(x, ((0, b_pad - B), (0, 0), (0, 0)))

    # Matmul weights are stored/streamed as bf16 (MXU-native on v5e/v6e/v7x);
    # LayerNorm params and biases stay f32 and are applied after the
    # f32-accumulating dot.
    bf16 = jnp.bfloat16
    c1w = params["c1w"].astype(bf16)
    c2w = params["c2w"].astype(bf16)
    r1w = params["r1w"].astype(bf16)
    r2w = params["r2w"].astype(bf16)

    def full_spec(shape):
        return pl.BlockSpec(shape, lambda b: (0,) * len(shape))

    in_specs = [
        pl.BlockSpec((bt, K, D), lambda b: (b, 0, 0)),   # x block
        full_spec((1, K)),    # col LN weight
        full_spec((1, K)),    # col LN bias
        full_spec((K, Hc)),   # col linear1 weight (in, out)
        full_spec((1, Hc)),   # col linear1 bias
        full_spec((Hc, K)),   # col linear2 weight
        full_spec((1, K)),    # col linear2 bias
        full_spec((1, D)),    # row LN weight
        full_spec((1, D)),    # row LN bias
        full_spec((D, Hr)),   # row linear1 weight
        full_spec((1, Hr)),   # row linear1 bias
        full_spec((Hr, D)),   # row linear2 weight
        full_spec((1, D)),    # row linear2 bias
    ]

    weight_bytes = (
        sum(int(w.size) * w.dtype.itemsize for w in (c1w, c2w, r1w, r2w))
        + sum(int(params[n].size) * 4
              for n in ("cn_w", "cn_b", "c1b", "c2b",
                        "rn_w", "rn_b", "r1b", "r2b"))
    )
    cost = pl.CostEstimate(
        flops=4 * b_pad * K * D * (Hc + Hr),
        transcendentals=b_pad * (D * Hc + K * Hr),
        bytes_accessed=2 * b_pad * K * D * 4 + weight_bytes,
    )

    out = pl.pallas_call(
        _mixer_kernel,
        out_shape=jax.ShapeDtypeStruct((b_pad, K, D), x.dtype),
        grid_spec=pltpu.PrefetchScalarGridSpec(
            num_scalar_prefetch=0,
            grid=(b_pad // bt,),
            in_specs=in_specs,
            out_specs=pl.BlockSpec((bt, K, D), lambda b: (b, 0, 0)),
        ),
        compiler_params=pltpu.CompilerParams(
            dimension_semantics=("parallel",),   # shards batch across TCs (v7x)
        ),
        cost_estimate=cost,
    )(
        x,
        params["cn_w"], params["cn_b"], c1w, params["c1b"], c2w, params["c2b"],
        params["rn_w"], params["rn_b"], r1w, params["r1b"], r2w, params["r2b"],
    )
    return out[:B] if b_pad != B else out


def init_params(key, dim, context_size,
                col_expansion_factor=0.5, row_expansion_factor=4):
    """Deterministic parameter init matching the PyTorch module's shapes.

    nn.Linear(in, out) stores weight (out, in); we keep (in, out) so the
    kernel computes x @ W + b.  LayerNorm weights init to 1, biases to 0
    (PyTorch defaults)."""
    Hc = int(col_expansion_factor * context_size)
    Hr = int(row_expansion_factor * dim)
    ks = jax.random.split(key, 8)
    scale = 0.02
    f32 = jnp.float32
    params = {
        # column MLP (operates on length-context_size vectors)
        "cn_w": jnp.ones((1, context_size), f32),
        "cn_b": jnp.zeros((1, context_size), f32),
        "c1w": scale * jax.random.normal(ks[0], (context_size, Hc), f32),
        "c1b": scale * jax.random.normal(ks[1], (1, Hc), f32),
        "c2w": scale * jax.random.normal(ks[2], (Hc, context_size), f32),
        "c2b": scale * jax.random.normal(ks[3], (1, context_size), f32),
        # row MLP (operates on length-dim vectors)
        "rn_w": jnp.ones((1, dim), f32),
        "rn_b": jnp.zeros((1, dim), f32),
        "r1w": scale * jax.random.normal(ks[4], (dim, Hr), f32),
        "r1b": scale * jax.random.normal(ks[5], (1, Hr), f32),
        "r2w": scale * jax.random.normal(ks[6], (Hr, dim), f32),
        "r2b": scale * jax.random.normal(ks[7], (1, dim), f32),
    }
    return params


def reference_forward(x, p):
    """Pure-JAX f32 reference mirroring the PyTorch forward (sanity check)."""
    def ln(v, w, b):
        mu = v.mean(-1, keepdims=True)
        var = ((v - mu) ** 2).mean(-1, keepdims=True)
        return (v - mu) / jnp.sqrt(var + _LN_EPS) * w + b

    def gelu(v):
        return 0.5 * v * (1.0 + jax.lax.erf(v * 0.7071067811865476))

    xt = jnp.swapaxes(x, 1, 2)
    h = gelu(ln(xt, p["cn_w"], p["cn_b"]) @ p["c1w"] + p["c1b"]) @ p["c2w"] + p["c2b"]
    x = x + jnp.swapaxes(h, 1, 2)
    h = gelu(ln(x, p["rn_w"], p["rn_b"]) @ p["r1w"] + p["r1b"]) @ p["r2w"] + p["r2b"]
    return x + h


if __name__ == "__main__":
    # Small shapes: B x K x d with K = context_size = 8, d = dim = 16.
    B, K, D = 4, 8, 16
    key = jax.random.PRNGKey(0)
    k_x, k_p = jax.random.split(key)

    x = jax.random.normal(k_x, (B, K, D), jnp.float32)
    params = init_params(k_p, dim=D, context_size=K)

    out = mlp_mixer_forward(x, params)
    out = jax.block_until_ready(out)

    ref = reference_forward(x, params)
    assert out.shape == (B, K, D)
    # Tolerance loosened slightly vs. the pure-f32 version because the matmul
    # operands are bf16 (f32 accumulation); with 0.02-scale weights the actual
    # error is ~1e-4.
    assert jnp.allclose(out, ref, atol=5e-3, rtol=5e-3), "mismatch vs reference"

    print("KERNEL_OK")
</pallas_src>

<mosaic_0001>
module attributes {stable_mosaic.version = 11 : i64} {
  func.func @_mixer_kernel(%arg0: i32, %arg1: memref<4x8x16xf32, #tpu.memory_space<vmem>>, %arg2: memref<1x8xf32, #tpu.memory_space<vmem>>, %arg3: memref<1x8xf32, #tpu.memory_space<vmem>>, %arg4: memref<8x4xbf16, #tpu.memory_space<vmem>>, %arg5: memref<1x4xf32, #tpu.memory_space<vmem>>, %arg6: memref<4x8xbf16, #tpu.memory_space<vmem>>, %arg7: memref<1x8xf32, #tpu.memory_space<vmem>>, %arg8: memref<1x16xf32, #tpu.memory_space<vmem>>, %arg9: memref<1x16xf32, #tpu.memory_space<vmem>>, %arg10: memref<16x64xbf16, #tpu.memory_space<vmem>>, %arg11: memref<1x64xf32, #tpu.memory_space<vmem>>, %arg12: memref<64x16xbf16, #tpu.memory_space<vmem>>, %arg13: memref<1x16xf32, #tpu.memory_space<vmem>>, %arg14: memref<4x8x16xf32, #tpu.memory_space<vmem>>) attributes {dimension_semantics = [#tpu.dimension_semantics<parallel>], iteration_bounds = array<i64: 1>, scalar_prefetch = 0 : i64, scratch_operands = 0 : i64, tpu.core_type = #tpu.core_type<tc>, window_params = [{transform_indices = @transform_0, window_bounds = array<i64: 4, 8, 16>}, {pipeline_mode = #tpu.pipeline_mode<synchronous>, transform_indices = @transform_1, window_bounds = array<i64: 1, 8>}, {pipeline_mode = #tpu.pipeline_mode<synchronous>, transform_indices = @transform_2, window_bounds = array<i64: 1, 8>}, {pipeline_mode = #tpu.pipeline_mode<synchronous>, transform_indices = @transform_3, window_bounds = array<i64: 8, 4>}, {pipeline_mode = #tpu.pipeline_mode<synchronous>, transform_indices = @transform_4, window_bounds = array<i64: 1, 4>}, {pipeline_mode = #tpu.pipeline_mode<synchronous>, transform_indices = @transform_5, window_bounds = array<i64: 4, 8>}, {pipeline_mode = #tpu.pipeline_mode<synchronous>, transform_indices = @transform_6, window_bounds = array<i64: 1, 8>}, {pipeline_mode = #tpu.pipeline_mode<synchronous>, transform_indices = @transform_7, window_bounds = array<i64: 1, 16>}, {pipeline_mode = #tpu.pipeline_mode<synchronous>, transform_indices = @transform_8, window_bounds = array<i64: 1, 16>}, {pipeline_mode = #tpu.pipeline_mode<synchronous>, transform_indices = @transform_9, window_bounds = array<i64: 16, 64>}, {pipeline_mode = #tpu.pipeline_mode<synchronous>, transform_indices = @transform_10, window_bounds = array<i64: 1, 64>}, {pipeline_mode = #tpu.pipeline_mode<synchronous>, transform_indices = @transform_11, window_bounds = array<i64: 64, 16>}, {pipeline_mode = #tpu.pipeline_mode<synchronous>, transform_indices = @transform_12, window_bounds = array<i64: 1, 16>}, {transform_indices = @transform_13, window_bounds = array<i64: 4, 8, 16>}]} {
    %c0 = arith.constant 0 : index
    %c0_0 = arith.constant 0 : index
    %c0_1 = arith.constant 0 : index
    %0 = vector.load %arg1[%c0, %c0_0, %c0_1] : memref<4x8x16xf32, #tpu.memory_space<vmem>>, vector<4x8x16xf32>
    %1 = tpu.transpose %0, [0, 2, 1] : vector<4x8x16xf32> -> vector<4x16x8xf32>
    %2 = vector.shape_cast %1 : vector<4x16x8xf32> to vector<64x8xf32>
    %c0_2 = arith.constant 0 : index
    %c0_3 = arith.constant 0 : index
    %3 = vector.load %arg2[%c0_2, %c0_3] : memref<1x8xf32, #tpu.memory_space<vmem>>, vector<1x8xf32>
    %c0_4 = arith.constant 0 : index
    %c0_5 = arith.constant 0 : index
    %4 = vector.load %arg3[%c0_4, %c0_5] : memref<1x8xf32, #tpu.memory_space<vmem>>, vector<1x8xf32>
    %cst = arith.constant dense<0.000000e+00> : vector<64xf32>
    %5 = vector.multi_reduction <add>, %2, %cst [1] : vector<64x8xf32> to vector<64xf32>
    %6 = vector.shape_cast %5 : vector<64xf32> to vector<64x1xf32>
    %cst_6 = arith.constant 8.000000e+00 : f32
    %7 = vector.broadcast %cst_6 : f32 to vector<64x1xf32>
    %8 = arith.divf %6, %7 : vector<64x1xf32>
    %9 = vector.broadcast %8 : vector<64x1xf32> to vector<64x8xf32>
    %10 = arith.subf %2, %9 : vector<64x8xf32>
    %11 = arith.mulf %10, %10 : vector<64x8xf32>
    %cst_7 = arith.constant dense<0.000000e+00> : vector<64xf32>
    %12 = vector.multi_reduction <add>, %11, %cst_7 [1] : vector<64x8xf32> to vector<64xf32>
    %13 = vector.shape_cast %12 : vector<64xf32> to vector<64x1xf32>
    %cst_8 = arith.constant 8.000000e+00 : f32
    %14 = vector.broadcast %cst_8 : f32 to vector<64x1xf32>
    %15 = arith.divf %13, %14 : vector<64x1xf32>
    %16 = vector.broadcast %8 : vector<64x1xf32> to vector<64x8xf32>
    %17 = arith.subf %2, %16 : vector<64x8xf32>
    %cst_9 = arith.constant 9.99999974E-6 : f32
    %18 = vector.broadcast %cst_9 : f32 to vector<64x1xf32>
    %19 = arith.addf %15, %18 : vector<64x1xf32>
    %20 = math.rsqrt %19 : vector<64x1xf32>
    %21 = vector.broadcast %20 : vector<64x1xf32> to vector<64x8xf32>
    %22 = arith.mulf %17, %21 : vector<64x8xf32>
    %23 = vector.broadcast %3 : vector<1x8xf32> to vector<64x8xf32>
    %24 = arith.mulf %22, %23 : vector<64x8xf32>
    %25 = vector.broadcast %4 : vector<1x8xf32> to vector<64x8xf32>
    %26 = arith.addf %24, %25 : vector<64x8xf32>
    %c0_10 = arith.constant 0 : index
    %c0_11 = arith.constant 0 : index
    %27 = vector.load %arg4[%c0_10, %c0_11] : memref<8x4xbf16, #tpu.memory_space<vmem>>, vector<8x4xbf16>
    %c0_12 = arith.constant 0 : index
    %c0_13 = arith.constant 0 : index
    %28 = vector.load %arg5[%c0_12, %c0_13] : memref<1x4xf32, #tpu.memory_space<vmem>>, vector<1x4xf32>
    %29 = arith.truncf %26 : vector<64x8xf32> to vector<64x8xbf16>
    %cst_14 = arith.constant dense<0.000000e+00> : vector<64x4xf32>
    %30 = tpu.matmul %29, %27, %cst_14 {dimension_numbers = #tpu.dot_dimension_numbers<[1], [0], [0], [1], [0, 0, 1, 1], [], []>} : vector<64x8xbf16>, vector<8x4xbf16>, vector<64x4xf32> -> vector<64x4xf32>
    %31 = vector.broadcast %28 : vector<1x4xf32> to vector<64x4xf32>
    %32 = arith.addf %30, %31 : vector<64x4xf32>
    %cst_15 = arith.constant 5.000000e-01 : f32
    %33 = vector.broadcast %cst_15 : f32 to vector<64x4xf32>
    %34 = arith.mulf %33, %32 : vector<64x4xf32>
    %cst_16 = arith.constant 0.707106769 : f32
    %35 = vector.broadcast %cst_16 : f32 to vector<64x4xf32>
    %36 = arith.mulf %32, %35 : vector<64x4xf32>
    %37 = math.erf %36 : vector<64x4xf32>
    %cst_17 = arith.constant 1.000000e+00 : f32
    %38 = vector.broadcast %cst_17 : f32 to vector<64x4xf32>
    %39 = arith.addf %38, %37 : vector<64x4xf32>
    %40 = arith.mulf %34, %39 : vector<64x4xf32>
    %c0_18 = arith.constant 0 : index
    %c0_19 = arith.constant 0 : index
    %41 = vector.load %arg6[%c0_18, %c0_19] : memref<4x8xbf16, #tpu.memory_space<vmem>>, vector<4x8xbf16>
    %c0_20 = arith.constant 0 : index
    %c0_21 = arith.constant 0 : index
    %42 = vector.load %arg7[%c0_20, %c0_21] : memref<1x8xf32, #tpu.memory_space<vmem>>, vector<1x8xf32>
    %43 = arith.truncf %40 : vector<64x4xf32> to vector<64x4xbf16>
    %cst_22 = arith.constant dense<0.000000e+00> : vector<64x8xf32>
    %44 = tpu.matmul %43, %41, %cst_22 {dimension_numbers = #tpu.dot_dimension_numbers<[1], [0], [0], [1], [0, 0, 1, 1], [], []>} : vector<64x4xbf16>, vector<4x8xbf16>, vector<64x8xf32> -> vector<64x8xf32>
    %45 = vector.broadcast %42 : vector<1x8xf32> to vector<64x8xf32>
    %46 = arith.addf %44, %45 : vector<64x8xf32>
    %47 = vector.shape_cast %46 : vector<64x8xf32> to vector<4x16x8xf32>
    %48 = tpu.transpose %47, [0, 2, 1] : vector<4x16x8xf32> -> vector<4x8x16xf32>
    %49 = arith.addf %0, %48 : vector<4x8x16xf32>
    %50 = vector.shape_cast %49 : vector<4x8x16xf32> to vector<32x16xf32>
    %c0_23 = arith.constant 0 : index
    %c0_24 = arith.constant 0 : index
    %51 = vector.load %arg8[%c0_23, %c0_24] : memref<1x16xf32, #tpu.memory_space<vmem>>, vector<1x16xf32>
    %c0_25 = arith.constant 0 : index
    %c0_26 = arith.constant 0 : index
    %52 = vector.load %arg9[%c0_25, %c0_26] : memref<1x16xf32, #tpu.memory_space<vmem>>, vector<1x16xf32>
    %cst_27 = arith.constant dense<0.000000e+00> : vector<32xf32>
    %53 = vector.multi_reduction <add>, %50, %cst_27 [1] : vector<32x16xf32> to vector<32xf32>
    %54 = vector.shape_cast %53 : vector<32xf32> to vector<32x1xf32>
    %cst_28 = arith.constant 1.600000e+01 : f32
    %55 = vector.broadcast %cst_28 : f32 to vector<32x1xf32>
    %56 = arith.divf %54, %55 : vector<32x1xf32>
    %57 = vector.broadcast %56 : vector<32x1xf32> to vector<32x16xf32>
    %58 = arith.subf %50, %57 : vector<32x16xf32>
    %59 = arith.mulf %58, %58 : vector<32x16xf32>
    %cst_29 = arith.constant dense<0.000000e+00> : vector<32xf32>
    %60 = vector.multi_reduction <add>, %59, %cst_29 [1] : vector<32x16xf32> to vector<32xf32>
    %61 = vector.shape_cast %60 : vector<32xf32> to vector<32x1xf32>
    %cst_30 = arith.constant 1.600000e+01 : f32
    %62 = vector.broadcast %cst_30 : f32 to vector<32x1xf32>
    %63 = arith.divf %61, %62 : vector<32x1xf32>
    %64 = vector.broadcast %56 : vector<32x1xf32> to vector<32x16xf32>
    %65 = arith.subf %50, %64 : vector<32x16xf32>
    %cst_31 = arith.constant 9.99999974E-6 : f32
    %66 = vector.broadcast %cst_31 : f32 to vector<32x1xf32>
    %67 = arith.addf %63, %66 : vector<32x1xf32>
    %68 = math.rsqrt %67 : vector<32x1xf32>
    %69 = vector.broadcast %68 : vector<32x1xf32> to vector<32x16xf32>
    %70 = arith.mulf %65, %69 : vector<32x16xf32>
    %71 = vector.broadcast %51 : vector<1x16xf32> to vector<32x16xf32>
    %72 = arith.mulf %70, %71 : vector<32x16xf32>
    %73 = vector.broadcast %52 : vector<1x16xf32> to vector<32x16xf32>
    %74 = arith.addf %72, %73 : vector<32x16xf32>
    %c0_32 = arith.constant 0 : index
    %c0_33 = arith.constant 0 : index
    %75 = vector.load %arg10[%c0_32, %c0_33] : memref<16x64xbf16, #tpu.memory_space<vmem>>, vector<16x64xbf16>
    %c0_34 = arith.constant 0 : index
    %c0_35 = arith.constant 0 : index
    %76 = vector.load %arg11[%c0_34, %c0_35] : memref<1x64xf32, #tpu.memory_space<vmem>>, vector<1x64xf32>
    %77 = arith.truncf %74 : vector<32x16xf32> to vector<32x16xbf16>
    %cst_36 = arith.constant dense<0.000000e+00> : vector<32x64xf32>
    %78 = tpu.matmul %77, %75, %cst_36 {dimension_numbers = #tpu.dot_dimension_numbers<[1], [0], [0], [1], [0, 0, 1, 1], [], []>} : vector<32x16xbf16>, vector<16x64xbf16>, vector<32x64xf32> -> vector<32x64xf32>
    %79 = vector.broadcast %76 : vector<1x64xf32> to vector<32x64xf32>
    %80 = arith.addf %78, %79 : vector<32x64xf32>
    %cst_37 = arith.constant 5.000000e-01 : f32
    %81 = vector.broadcast %cst_37 : f32 to vector<32x64xf32>
    %82 = arith.mulf %81, %80 : vector<32x64xf32>
    %cst_38 = arith.constant 0.707106769 : f32
    %83 = vector.broadcast %cst_38 : f32 to vector<32x64xf32>
    %84 = arith.mulf %80, %83 : vector<32x64xf32>
    %85 = math.erf %84 : vector<32x64xf32>
    %cst_39 = arith.constant 1.000000e+00 : f32
    %86 = vector.broadcast %cst_39 : f32 to vector<32x64xf32>
    %87 = arith.addf %86, %85 : vector<32x64xf32>
    %88 = arith.mulf %82, %87 : vector<32x64xf32>
    %c0_40 = arith.constant 0 : index
    %c0_41 = arith.constant 0 : index
    %89 = vector.load %arg12[%c0_40, %c0_41] : memref<64x16xbf16, #tpu.memory_space<vmem>>, vector<64x16xbf16>
    %c0_42 = arith.constant 0 : index
    %c0_43 = arith.constant 0 : index
    %90 = vector.load %arg13[%c0_42, %c0_43] : memref<1x16xf32, #tpu.memory_space<vmem>>, vector<1x16xf32>
    %91 = arith.truncf %88 : vector<32x64xf32> to vector<32x64xbf16>
    %cst_44 = arith.constant dense<0.000000e+00> : vector<32x16xf32>
    %92 = tpu.matmul %91, %89, %cst_44 {dimension_numbers = #tpu.dot_dimension_numbers<[1], [0], [0], [1], [0, 0, 1, 1], [], []>} : vector<32x64xbf16>, vector<64x16xbf16>, vector<32x16xf32> -> vector<32x16xf32>
    %93 = vector.broadcast %90 : vector<1x16xf32> to vector<32x16xf32>
    %94 = arith.addf %92, %93 : vector<32x16xf32>
    %95 = arith.addf %50, %94 : vector<32x16xf32>
    %96 = vector.shape_cast %95 : vector<32x16xf32> to vector<4x8x16xf32>
    %c0_45 = arith.constant 0 : index
    %c0_46 = arith.constant 0 : index
    %c0_47 = arith.constant 0 : index
    %97 = vector.load %arg14[%c0_45, %c0_46, %c0_47] : memref<4x8x16xf32, #tpu.memory_space<vmem>>, vector<4x8x16xf32>
    tpu.vector_store %arg14[%c0_45, %c0_46, %c0_47], %96 {strides = array<i32>} : memref<4x8x16xf32, #tpu.memory_space<vmem>>, vector<4x8x16xf32>,
    return
  }
  func.func @transform_0(%arg0: i32) -> (i32, i32, i32) {
    %c0_i32 = arith.constant 0 : i32
    %c0_i32_0 = arith.constant 0 : i32
    %c0_i32_1 = arith.constant 0 : i32
    return %arg0, %c0_i32, %c0_i32_0 : i32, i32, i32
  }
  func.func @transform_1(%arg0: i32) -> (i32, i32) {
    %c0_i32 = arith.constant 0 : i32
    %c0_i32_0 = arith.constant 0 : i32
    %c0_i32_1 = arith.constant 0 : i32
    return %c0_i32, %c0_i32_0 : i32, i32
  }
  func.func @transform_2(%arg0: i32) -> (i32, i32) {
    %c0_i32 = arith.constant 0 : i32
    %c0_i32_0 = arith.constant 0 : i32
    %c0_i32_1 = arith.constant 0 : i32
    return %c0_i32, %c0_i32_0 : i32, i32
  }
  func.func @transform_3(%arg0: i32) -> (i32, i32) {
    %c0_i32 = arith.constant 0 : i32
    %c0_i32_0 = arith.constant 0 : i32
    %c0_i32_1 = arith.constant 0 : i32
    return %c0_i32, %c0_i32_0 : i32, i32
  }
  func.func @transform_4(%arg0: i32) -> (i32, i32) {
    %c0_i32 = arith.constant 0 : i32
    %c0_i32_0 = arith.constant 0 : i32
    %c0_i32_1 = arith.constant 0 : i32
    return %c0_i32, %c0_i32_0 : i32, i32
  }
  func.func @transform_5(%arg0: i32) -> (i32, i32) {
    %c0_i32 = arith.constant 0 : i32
    %c0_i32_0 = arith.constant 0 : i32
    %c0_i32_1 = arith.constant 0 : i32
    return %c0_i32, %c0_i32_0 : i32, i32
  }
  func.func @transform_6(%arg0: i32) -> (i32, i32) {
    %c0_i32 = arith.constant 0 : i32
    %c0_i32_0 = arith.constant 0 : i32
    %c0_i32_1 = arith.constant 0 : i32
    return %c0_i32, %c0_i32_0 : i32, i32
  }
  func.func @transform_7(%arg0: i32) -> (i32, i32) {
    %c0_i32 = arith.constant 0 : i32
    %c0_i32_0 = arith.constant 0 : i32
    %c0_i32_1 = arith.constant 0 : i32
    return %c0_i32, %c0_i32_0 : i32, i32
  }
  func.func @transform_8(%arg0: i32) -> (i32, i32) {
    %c0_i32 = arith.constant 0 : i32
    %c0_i32_0 = arith.constant 0 : i32
    %c0_i32_1 = arith.constant 0 : i32
    return %c0_i32, %c0_i32_0 : i32, i32
  }
  func.func @transform_9(%arg0: i32) -> (i32, i32) {
    %c0_i32 = arith.constant 0 : i32
    %c0_i32_0 = arith.constant 0 : i32
    %c0_i32_1 = arith.constant 0 : i32
    return %c0_i32, %c0_i32_0 : i32, i32
  }
  func.func @transform_10(%arg0: i32) -> (i32, i32) {
    %c0_i32 = arith.constant 0 : i32
    %c0_i32_0 = arith.constant 0 : i32
    %c0_i32_1 = arith.constant 0 : i32
    return %c0_i32, %c0_i32_0 : i32, i32
  }
  func.func @transform_11(%arg0: i32) -> (i32, i32) {
    %c0_i32 = arith.constant 0 : i32
    %c0_i32_0 = arith.constant 0 : i32
    %c0_i32_1 = arith.constant 0 : i32
    return %c0_i32, %c0_i32_0 : i32, i32
  }
  func.func @transform_12(%arg0: i32) -> (i32, i32) {
    %c0_i32 = arith.constant 0 : i32
    %c0_i32_0 = arith.constant 0 : i32
    %c0_i32_1 = arith.constant 0 : i32
    return %c0_i32, %c0_i32_0 : i32, i32
  }
  func.func @transform_13(%arg0: i32) -> (i32, i32, i32) {
    %c0_i32 = arith.constant 0 : i32
    %c0_i32_0 = arith.constant 0 : i32
    %c0_i32_1 = arith.constant 0 : i32
    return %arg0, %c0_i32, %c0_i32_0 : i32, i32, i32
  }
}

</mosaic_0001>

<bundles_post_ra>
// kernel: tpu_custom_call.1
= control target key start
LH: loop header
LB: loop body
LE: loop exit
PB: predicated region body
PF: predicated region fallthrough
CT: control target
= control target key end

     0   :  { %s1383_s0 = inlined_call_operand.vmem [shape: f32[4,8,16], index: 0, kind: input, shape index: {}]   ;;  %s1384_s1 = inlined_call_operand.vmem [shape: f32[1,8], index: 1, kind: input, shape index: {}]   ;;  %s1385_s2 = inlined_call_operand.vmem [shape: f32[1,8], index: 2, kind: input, shape index: {}]   ;;  %s1386_s3 = inlined_call_operand.vmem [shape: bf16[8,4], index: 3, kind: input, shape index: {}]   ;;  %s1387_s4 = inlined_call_operand.vmem [shape: f32[1,4], index: 4, kind: input, shape index: {}]   ;;  %s1388_s5 = inlined_call_operand.vmem [shape: bf16[4,8], index: 5, kind: input, shape index: {}]   ;;  %s1389_s6 = inlined_call_operand.vmem [shape: f32[1,8], index: 6, kind: input, shape index: {}]   ;;  %s1390_s7 = inlined_call_operand.vmem [shape: f32[1,16], index: 7, kind: input, shape index: {}]   ;;  %s1391_s8 = inlined_call_operand.vmem [shape: f32[1,16], index: 8, kind: input, shape index: {}]   ;;  %s1392_s9 = inlined_call_operand.vmem [shape: bf16[16,64], index: 9, kind: input, shape index: {}]   ;;  %s1393_s10 = inlined_call_operand.vmem [shape: f32[1,64], index: 10, kind: input, shape index: {}]   ;;  %s1394_s11 = inlined_call_operand.vmem [shape: bf16[64,16], index: 11, kind: input, shape index: {}]   ;;  %s1395_s12 = inlined_call_operand.vmem [shape: f32[1,16], index: 12, kind: input, shape index: {}]   ;;  %s1396_s13 = inlined_call_operand.hbm [shape: f32[4,8,16], index: 13, kind: output, shape index: {}]  }
   0x1   :  { %v1203_v0 = vld [vmem:[%s1383_s0 + $0x10] sm:$0xff]  ;;  %v1208_v1 = vld [vmem:[%s1383_s0] sm:$0xff]  ;;  %v1215_v2 = vld [vmem:[%s1383_s0 + $0x18] sm:$0xff] }
   0x2   :  { %114 = vxpose.xlu1.b32.start.end [1/1] (short) (narrow) %v1203_v0, 16  ;;  %50 = vxpose.xlu0.b32.start.end [1/1] (short) (narrow) %v1208_v1, 16  ;;  %v1220_v3 = vld [vmem:[%s1383_s0 + $0x8] sm:$0xff] }
   0x3   :  { %18 = vsyncpa [#allocation3], 0  ;;  %vm180_vm0 = vcmask 64512   ;;  %v314_v60 = vld [vmem:[%s1386_s3] sm:$0xf]  ;;  %vm338_vm1 = vcmask 1043456  }
   0x4   :  { %1044 = vmatprep.subr.msk.bf16.mxu0 %vm338_vm1, %v314_v60  ;;  %v340_v61 = vsel %vm338_vm1, %v314_v60, 0  ;;  %vm472_vm2 = vcmask 1041408   ;;  %vm459_vm3 = vcmask 31744   ;;  %vm675_vm4 = vcmask 130048   ;;  %s1127_s16 = smov [#allocation2]  }
   0x5   :  { %1007 = vmatpush3.bf16.msra.mxu0 %v340_v61  ;;  %vm882_vm5 = vcmask 523264   ;;  %s951_s3 = sshll.u32 %s1127_s16, 4  ;;  %s952_s3 = int_to_ptr.vmem [resolvable:$true] %s951_s3 }
   0x6   :  { %p1108_p1 = scmp.lt.s32.totalorder %s952_s3, %s952_s3 }
   0x7   :  { %146 = vxpose.xlu1.b32.start.end [1/1] (short) (narrow) %v1215_v2, 16  ;;  %82 = vxpose.xlu0.b32.start.end [1/1] (short) (narrow) %v1220_v3, 16 }
  0x82   :  { %v130_v4 = vpop.trf.xlu1  ;;  %v66_v5 = vpop.trf.xlu0 }
  0x83   :  { %v181_v6 = vsel %vm180_vm0, %v66_v5, 0.0  ;;  %v193_v7 = vsel %vm180_vm0, %v130_v4, 0.0 }
  0x84   :  { %182 = vadd.xlane.f32.xlu0 %v181_v6 }
  0x86   :  { %v131_v8 = vpop.trf.xlu1  ;;  %v67_v9 = vpop.trf.xlu0 }
  0x87   :  { %v184_v15 = vsel %vm180_vm0, %v67_v9, 0.0  ;;  %v196_v18 = vsel %vm180_vm0, %v131_v8, 0.0 }
  0x88   :  { %194 = vadd.xlane.f32.xlu0 %v193_v7 }
  0x8a   :  { %v162_v10 = vpop.trf.xlu1  ;;  %v98_v11 = vpop.trf.xlu0 }
  0x8b   :  { %v199_v12 = vsel %vm180_vm0, %v162_v10, 0.0  ;;  %v187_v13 = vsel %vm180_vm0, %v98_v11, 0.0 }
  0x8c   :  { %200 = vadd.xlane.f32.xlu0 %v199_v12  ;;  %188 = vadd.xlane.f32.xlu1 %v187_v13 }
  0x8e   :  { %v99_v14 = vpop.trf.xlu0  ;;  %v163_v17 = vpop.trf.xlu1 }
  0x8f   :  { %v190_v16 = vsel %vm180_vm0, %v99_v14, 0.0  ;;  %v202_v19 = vsel %vm180_vm0, %v163_v17, 0.0 }
  0x90   :  { %185 = vadd.xlane.f32.xlu1 %v184_v15 }
  0x94   :  { %191 = vadd.xlane.f32.xlu1 %v190_v16 }
  0x98   :  { %197 = vadd.xlane.f32.xlu1 %v196_v18 }
  0x9c   :  { %203 = vadd.xlane.f32.xlu1 %v202_v19 }
 0x111   :  { %v183_v20 = vpop.xlane.xlu0 %182 }
 0x112   :  { %v206_v21 = vmul.f32 0.125, %v183_v20 }
 0x114   :  { %v1232_v22 = vsub.f32 %v66_v5, %v206_v21 }
 0x115   :  { %v195_v23 = vpop.xlane.xlu0 %194 }
 0x116   :  { %v222_v24 = vmul.f32 %v1232_v22, %v1232_v22  ;;  %v210_v25 = vmul.f32 0.125, %v195_v23 }
 0x118   :  { %v230_v26 = vsel %vm180_vm0, %v222_v24, 0.0  ;;  %v1237_v30 = vsub.f32 %v130_v4, %v210_v25 }
 0x119   :  { %v189_v27 = vpop.xlane.xlu1 %188  ;;  %231 = vadd.xlane.f32.xlu0 %v230_v26  ;;  %v201_v28 = vpop.xlane.xlu0 %200 }
 0x11a   :  { %v208_v29 = vmul.f32 0.125, %v189_v27  ;;  %v212_v32 = vmul.f32 0.125, %v201_v28  ;;  %v226_v39 = vmul.f32 %v1237_v30, %v1237_v30 }
 0x11c   :  { %v1239_v31 = vsub.f32 %v98_v11, %v208_v29  ;;  %v1243_v36 = vsub.f32 %v162_v10, %v212_v32  ;;  %v242_v45 = vsel %vm180_vm0, %v226_v39, 0.0  ;;  %v962_v29 = vld [vmem:[%s1384_s1] ss:$0 sm:$0xff] }
 0x11d   :  { %v186_v33 = vpop.xlane.xlu1 %185 }
 0x11e   :  { %v207_v34 = vmul.f32 0.125, %v186_v33  ;;  %v224_v35 = vmul.f32 %v1239_v31, %v1239_v31  ;;  %v228_v46 = vmul.f32 %v1243_v36, %v1243_v36 }
 0x120   :  { %v1245_v37 = vsub.f32 %v67_v9, %v207_v34  ;;  %v236_v38 = vsel %vm180_vm0, %v224_v35, 0.0  ;;  %v248_v52 = vsel %vm180_vm0, %v228_v46, 0.0 }
 0x121   :  { %v192_v40 = vpop.xlane.xlu1 %191  ;;  %237 = vadd.xlane.f32.xlu0 %v236_v38 }
 0x122   :  { %v209_v41 = vmul.f32 0.125, %v192_v40  ;;  %v223_v42 = vmul.f32 %v1245_v37, %v1245_v37  ;;  %v963_v40 = vld [vmem:[%s1385_s2] ss:$0 sm:$0xff] }
 0x124   :  { %v1252_v43 = vsub.f32 %v99_v14, %v209_v41  ;;  %v233_v44 = vsel %vm180_vm0, %v223_v42, 0.0 }
 0x125   :  { %234 = vadd.xlane.f32.xlu1 %v233_v44  ;;  %v198_v47 = vpop.xlane.xlu1 %197  ;;  %243 = vadd.xlane.f32.xlu0 %v242_v45 }
 0x126   :  { %v211_v48 = vmul.f32 0.125, %v198_v47  ;;  %v225_v49 = vmul.f32 %v1252_v43, %v1252_v43 }
 0x128   :  { %v1260_v50 = vsub.f32 %v131_v8, %v211_v48  ;;  %v239_v51 = vsel %vm180_vm0, %v225_v49, 0.0 }
 0x129   :  { %240 = vadd.xlane.f32.xlu1 %v239_v51  ;;  %v204_v53 = vpop.xlane.xlu1 %203  ;;  %249 = vadd.xlane.f32.xlu0 %v248_v52 }
 0x12a   :  { %v213_v54 = vmul.f32 0.125, %v204_v53  ;;  %v227_v55 = vmul.f32 %v1260_v50, %v1260_v50 }
 0x12c   :  { %v1266_v56 = vsub.f32 %v163_v17, %v213_v54  ;;  %v245_v57 = vsel %vm180_vm0, %v227_v55, 0.0 }
 0x12d   :  { %246 = vadd.xlane.f32.xlu1 %v245_v57 }
 0x12e   :  { %v229_v58 = vmul.f32 %v1266_v56, %v1266_v56 }
 0x130   :  { %v251_v59 = vsel %vm180_vm0, %v229_v58, 0.0 }
 0x131   :  { %252 = vadd.xlane.f32.xlu1 %v251_v59 }
 0x1a6   :  { %v232_v62 = vpop.xlane.xlu0 %231 }
 0x1a7   :  { %v254_v63 = vmul.f32 0.125, %v232_v62 }
 0x1a9   :  { %v262_v4 = vadd.f32 1e-05, %v254_v63 }
 0x1ab   :  { %1055 = vrsqrt.f32 %v262_v4 }
 0x1ae   :  { %v238_v5 = vpop.xlane.xlu0 %237 }
 0x1af   :  { %v256_v6 = vmul.f32 0.125, %v238_v5  ;;  %v447_v5 = vld [vmem:[%s1388_s5] sm:$0x3] }
 0x1b0   :  { %1045 = vmatprep.subr.msk.bf16.mxu1 %vm472_vm2, %v447_v5 }
 0x1b1   :  { %v264_v7 = vadd.f32 1e-05, %v256_v6  ;;  %v964_v6 = vld [vmem:[%s1387_s4] ss:$0 sm:$0xff] }
 0x1b2   :  { %v235_v8 = vpop.xlane.xlu1 %234  ;;  %v244_v9 = vpop.xlane.xlu0 %243 }
 0x1b3   :  { %v255_v10 = vmul.f32 0.125, %v235_v8  ;;  %v258_v11 = vmul.f32 0.125, %v244_v9  ;;  %1057 = vrsqrt.f32 %v264_v7 }
 0x1b5   :  { %v263_v12 = vadd.f32 1e-05, %v255_v10  ;;  %v266_v13 = vadd.f32 1e-05, %v258_v11  ;;  %v1056_v21 = vpop.eup %1055 }
 0x1b6   :  { %v241_v14 = vpop.xlane.xlu1 %240  ;;  %v250_v15 = vpop.xlane.xlu0 %249  ;;  %v278_v27 = vmul.f32 %v1056_v21, %v1232_v22 }
 0x1b7   :  { %1059 = vrsqrt.f32 %v263_v12  ;;  %v257_v16 = vmul.f32 0.125, %v241_v14  ;;  %v260_v17 = vmul.f32 0.125, %v250_v15 }
 0x1b8   :  { %1061 = vrsqrt.f32 %v266_v13  ;;  %v292_v38 = vmul.f32 %v962_v29, %v278_v27 }
 0x1b9   :  { %v265_v18 = vadd.f32 1e-05, %v257_v16  ;;  %v268_v19 = vadd.f32 1e-05, %v260_v17 }
 0x1ba   :  { %v247_v20 = vpop.xlane.xlu1 %246  ;;  %v306_v46 = vadd.f32 %v963_v40, %v292_v38 }
 0x1bb   :  { %1063 = vrsqrt.f32 %v265_v18  ;;  %v259_v23 = vmul.f32 0.125, %v247_v20 }
 0x1bc   :  { %1065 = vrsqrt.f32 %v268_v19 }
 0x1bd   :  { %v267_v24 = vadd.f32 1e-05, %v259_v23  ;;  %v1058_v25 = vpop.eup %1057 }
 0x1be   :  { %v253_v26 = vpop.xlane.xlu1 %252  ;;  %v280_v33 = vmul.f32 %v1058_v25, %v1239_v31 }
 0x1bf   :  { %1067 = vrsqrt.f32 %v267_v24  ;;  %v261_v28 = vmul.f32 0.125, %v253_v26 }
 0x1c0   :  { %v294_v42 = vmul.f32 %v962_v29, %v280_v33 }
 0x1c1   :  { %v1060_v32 = vpop.eup %1059  ;;  %v269_v34 = vadd.f32 1e-05, %v261_v28 }
 0x1c2   :  { %v279_v35 = vmul.f32 %v1060_v32, %v1245_v37  ;;  %v1062_v39 = vpop.eup %1061  ;;  %v308_v51 = vadd.f32 %v963_v40, %v294_v42 }
 0x1c3   :  { %1069 = vrsqrt.f32 %v269_v34  ;;  %v282_v44 = vmul.f32 %v1062_v39, %v1237_v30 }
 0x1c4   :  { %v293_v22 = vmul.f32 %v962_v29, %v279_v35 }
 0x1c5   :  { %v1064_v41 = vpop.eup %1063  ;;  %v296_v55 = vmul.f32 %v962_v29, %v282_v44 }
 0x1c6   :  { %v281_v45 = vmul.f32 %v1064_v41, %v1252_v43  ;;  %v307_v47 = vadd.f32 %v963_v40, %v293_v22  ;;  %v1066_v31 = vpop.eup %1065 }
 0x1c7   :  { %v284_v52 = vmul.f32 %v1066_v31, %v1243_v36  ;;  %v310_v59 = vadd.f32 %v963_v40, %v296_v55 }
 0x1c8   :  { %v316_v48 = vpack.c.bf16 %v307_v47, %v306_v46  ;;  %v295_v49 = vmul.f32 %v962_v29, %v281_v45 }
 0x1c9   :  { %v1068_v37 = vpop.eup %1067  ;;  %v298_v61 = vmul.f32 %v962_v29, %v284_v52 }
 0x1ca   :  { %v283_v53 = vmul.f32 %v1068_v37, %v1260_v50  ;;  %1008 = vmatprep.mubr.msk.bf16.mxu0 %vm180_vm0, %v316_v48  ;;  %v309_v54 = vadd.f32 %v963_v40, %v295_v49 }
 0x1cb   :  { %v312_v36 = vadd.f32 %v963_v40, %v298_v61 }
 0x1cc   :  { %v317_v57 = vpack.c.bf16 %v309_v54, %v308_v51  ;;  %v297_v58 = vmul.f32 %v962_v29, %v283_v53 }
 0x1cd   :  { %v1070_v30 = vpop.eup %1069 }
 0x1ce   :  { %v285_v43 = vmul.f32 %v1070_v30, %v1266_v56  ;;  %1009 = vmatmul.mubr.msk.bf16.vlgmr.msra.gmra.mrb[0].mxu0 %vm180_vm0, %v317_v57  ;;  %v311_v60 = vadd.f32 %v963_v40, %v297_v58  ;;  %v474_v56 = vsel %vm472_vm2, %v447_v5, 0 }
 0x1cf   :  { %1017 = vmatpush3.bf16.msra.mxu1 %v474_v56 }
 0x1d0   :  { %v318_v62 = vpack.c.bf16 %v311_v60, %v310_v59  ;;  %v299_v63 = vmul.f32 %v962_v29, %v285_v43 }
 0x1d2   :  { %1012 = vmatprep.mubr.msk.bf16.mxu0 %vm180_vm0, %v318_v62  ;;  %v313_v50 = vadd.f32 %v963_v40, %v299_v63 }
 0x1d4   :  { %v319_v4 = vpack.c.bf16 %v313_v50, %v312_v36 }
 0x1d6   :  { %1013 = vmatmul.mubr.msk.bf16.gmra.mrb[4].mxu0 %vm180_vm0, %v319_v4 }
 0x2a1   :  { %v1010_v7 = vpop.f32.mrb[0].mxu0 }
 0x2a2   :  { %v385_v8 = vadd.f32 %v1010_v7, %v964_v6  ;;  %v376_v9 = vpop.f32.mrb[1].mxu0  ;;  %v969_v7 = vld [vmem:[%s1389_s6] ss:$0 sm:$0xff] }
 0x2a3   :  { %v377_v10 = vadd.f32 %v964_v6, %v376_v9  ;;  %v1011_v11 = vpop.f32.mrb[2].mxu0 }
 0x2a4   :  { %v417_v12 = vmul.f32 0.70710677, %v385_v8  ;;  %v388_v13 = vadd.f32 %v1011_v11, %v964_v6  ;;  %v379_v14 = vpop.f32.mrb[3].mxu0  ;;  %v409_v41 = vmul.f32 0.5, %v385_v8 }
 0x2a5   :  { %v415_v15 = vmul.f32 0.70710677, %v377_v10  ;;  %v380_v16 = vadd.f32 %v964_v6, %v379_v14  ;;  %v407_v45 = vmul.f32 0.5, %v377_v10 }
 0x2a6   :  { %1071 = verf.f32 %v417_v12  ;;  %v418_v17 = vmul.f32 0.70710677, %v388_v13  ;;  %v410_v42 = vmul.f32 0.5, %v388_v13 }
 0x2a7   :  { %1073 = verf.f32 %v415_v15  ;;  %v416_v18 = vmul.f32 0.70710677, %v380_v16  ;;  %v408_v46 = vmul.f32 0.5, %v380_v16 }
 0x2a8   :  { %1075 = verf.f32 %v418_v17 }
 0x2a9   :  { %1077 = verf.f32 %v416_v18  ;;  %v1014_v19 = vpop.f32.mrb[4].mxu0 }
 0x2aa   :  { %v401_v20 = vadd.f32 %v1014_v19, %v964_v6  ;;  %v392_v21 = vpop.f32.mrb[5].mxu0 }
 0x2ab   :  { %v393_v23 = vadd.f32 %v964_v6, %v392_v21  ;;  %v1015_v24 = vpop.f32.mrb[6].mxu0 }
 0x2ac   :  { %v421_v25 = vmul.f32 0.70710677, %v401_v20  ;;  %v404_v26 = vadd.f32 %v1015_v24, %v964_v6  ;;  %v395_v27 = vpop.f32.mrb[7].mxu0  ;;  %v413_v43 = vmul.f32 0.5, %v401_v20 }
 0x2ad   :  { %v419_v28 = vmul.f32 0.70710677, %v393_v23  ;;  %v396_v29 = vadd.f32 %v964_v6, %v395_v27  ;;  %v411_v61 = vmul.f32 0.5, %v393_v23 }
 0x2ae   :  { %1079 = verf.f32 %v421_v25  ;;  %v422_v32 = vmul.f32 0.70710677, %v404_v26  ;;  %v414_v59 = vmul.f32 0.5, %v404_v26 }
 0x2af   :  { %1081 = verf.f32 %v419_v28  ;;  %v420_v33 = vmul.f32 0.70710677, %v396_v29  ;;  %v412_v62 = vmul.f32 0.5, %v396_v29 }
 0x2b0   :  { %v1072_v34 = vpop.eup %1071  ;;  %1083 = verf.f32 %v422_v32 }
 0x2b1   :  { %v1074_v35 = vpop.eup %1073  ;;  %v433_v38 = vadd.f32 1.0, %v1072_v34  ;;  %1085 = verf.f32 %v420_v33 }
 0x2b2   :  { %v1076_v39 = vpop.eup %1075  ;;  %v431_v40 = vadd.f32 1.0, %v1074_v35 }
 0x2b3   :  { %v1078_v22 = vpop.eup %1077  ;;  %v434_v44 = vadd.f32 1.0, %v1076_v39  ;;  %v441_v31 = vmul.f32 %v433_v38, %v409_v41 }
 0x2b4   :  { %v432_v47 = vadd.f32 1.0, %v1078_v22  ;;  %v439_v49 = vmul.f32 %v431_v40, %v407_v45 }
 0x2b5   :  { %v442_v48 = vmul.f32 %v434_v44, %v410_v42 }
 0x2b6   :  { %v440_v37 = vmul.f32 %v432_v47, %v408_v46 }
 0x2b7   :  { %v450_v51 = vpack.c.bf16 %v442_v48, %v441_v31 }
 0x2b8   :  { %v1080_v52 = vpop.eup %1079  ;;  %v449_v53 = vpack.c.bf16 %v440_v37, %v439_v49 }
 0x2b9   :  { %v1082_v54 = vpop.eup %1081  ;;  %v437_v55 = vadd.f32 1.0, %v1080_v52 }
 0x2ba   :  { %v1084_v57 = vpop.eup %1083  ;;  %v435_v58 = vadd.f32 1.0, %v1082_v54  ;;  %1018 = vmatprep.mubr.msk.bf16.mxu1 %vm459_vm3, %v449_v53 }
 0x2bb   :  { %v1086_v30 = vpop.eup %1085  ;;  %v438_v60 = vadd.f32 1.0, %v1084_v57  ;;  %1019 = vmatmul.mubr.msk.bf16.vlgmr.msra.gmra.mrb[0].mxu1 %vm459_vm3, %v450_v51  ;;  %v445_v36 = vmul.f32 %v437_v55, %v413_v43  ;;  %v1050_v57 = vld [vmem:[%s1392_s9] sm:$0xff]  }
 0x2bc   :  { %v436_v63 = vadd.f32 1.0, %v1086_v30  ;;  %v443_v4 = vmul.f32 %v435_v58, %v411_v61  ;;  %1026 = vmatprep.subr.bf16.mxu0 %v1050_v57 }
 0x2bd   :  { %v446_v50 = vmul.f32 %v438_v60, %v414_v59  ;;  %1027 = vmatpush3.bf16.msra.mxu0 %v1050_v57 }
 0x2be   :  { %v444_v5 = vmul.f32 %v436_v63, %v412_v62 }
 0x2bf   :  { %v452_v56 = vpack.c.bf16 %v446_v50, %v445_v36  ;;  %v974_v36 = vld [vmem:[%s1390_s7] ss:$0 sm:$0xff] }
 0x2c0   :  { %v451_v6 = vpack.c.bf16 %v444_v5, %v443_v4 }
 0x2c2   :  { %1022 = vmatprep.mubr.msk.bf16.mxu1 %vm459_vm3, %v451_v6 }
 0x2c3   :  { %1023 = vmatmul.mubr.msk.bf16.gmra.mrb[4].mxu1 %vm459_vm3, %v452_v56 }
 0x38e   :  { %v1020_v8 = vpop.f32.mrb[0].mxu1 }
 0x38f   :  { %v519_v9 = vadd.f32 %v1020_v8, %v969_v7  ;;  %v510_v10 = vpop.f32.mrb[1].mxu1 }
 0x390   :  { %v511_v11 = vadd.f32 %v969_v7, %v510_v10  ;;  %v1021_v12 = vpop.f32.mrb[2].mxu1 }
 0x391   :  { %573 = vxpose.xlu1.b32.start [1/2] (short) (narrow) %v519_v9, 8  ;;  %v513_v13 = vpop.f32.mrb[3].mxu1  ;;  %v522_v14 = vadd.f32 %v1021_v12, %v969_v7  ;;  %v975_v9 = vld [vmem:[%s1391_s8] ss:$0 sm:$0xff] }
 0x392   :  { %541 = vxpose.xlu0.b32.start [1/2] (short) (narrow) %v511_v11, 8  ;;  %v514_v15 = vadd.f32 %v969_v7, %v513_v13 }
 0x395   :  { %574 = vxpose.xlu1.b32.end [2/2] (short) (narrow) %v522_v14, 8 }
 0x396   :  { %542 = vxpose.xlu0.b32.end [2/2] (short) (narrow) %v514_v15, 8  ;;  %v1024_v16 = vpop.f32.mrb[4].mxu1 }
 0x397   :  { %v535_v17 = vadd.f32 %v1024_v16, %v969_v7  ;;  %v526_v18 = vpop.f32.mrb[5].mxu1 }
 0x398   :  { %v1025_v19 = vpop.f32.mrb[6].mxu1  ;;  %v527_v23 = vadd.f32 %v969_v7, %v526_v18 }
 0x399   :  { %v529_v20 = vpop.f32.mrb[7].mxu1  ;;  %v538_v21 = vadd.f32 %v1025_v19, %v969_v7 }
 0x39a   :  { %637 = vxpose.xlu0.b32.start [1/2] (short) (narrow) %v535_v17, 8  ;;  %v530_v24 = vadd.f32 %v969_v7, %v529_v20 }
 0x39e   :  { %638 = vxpose.xlu0.b32.end [2/2] (short) (narrow) %v538_v21, 8 }
 0x3a2   :  { %605 = vxpose.xlu0.b32.start [1/2] (short) (narrow) %v527_v23, 8 }
 0x3a6   :  { %606 = vxpose.xlu0.b32.end [2/2] (short) (narrow) %v530_v24, 8 }
 0x411   :  { %v589_v25 = vpop.trf.xlu1 }
 0x412   :  { %v1307_v26 = vadd.f32 %v589_v25, %v1220_v3  ;;  %v557_v27 = vpop.trf.xlu0 }
 0x413   :  { %v1310_v28 = vadd.f32 %v557_v27, %v1208_v1  ;;  %v1051_v27 = vld [vmem:[%s1394_s11] sm:$0xff]  }
 0x414   :  { %v679_v29 = vsel %vm675_vm4, %v1307_v26, 0.0  ;;  %1032 = vmatprep.subr.bf16.mxu1 %v1051_v27 }
 0x415   :  { %680 = vadd.xlane.f32.xlu0 %v679_v29  ;;  %v676_v32 = vsel %vm675_vm4, %v1310_v28, 0.0  ;;  %1033 = vmatpush3.bf16.msra.mxu1 %v1051_v27  ;;  %v1052_v29 = vld [vmem:[%s1394_s11 + $0x8] sm:$0xff]  }
 0x416   :  { %677 = vadd.xlane.f32.xlu1 %v676_v32  ;;  %1034 = vmatprep.subr.bf16.mxu1 %v1052_v29  ;;  %v1053_v32 = vld [vmem:[%s1394_s11 + $0x10] sm:$0xff]  }
 0x419   :  { %1035 = vmatpush3.bf16.msra.mxu1 %v1052_v29 }
 0x41a   :  { %v653_v33 = vpop.trf.xlu0  ;;  %1036 = vmatprep.subr.bf16.mxu1 %v1053_v32 }
 0x41b   :  { %v1320_v3 = vadd.f32 %v653_v33, %v1215_v2  ;;  %v1054_v33 = vld [vmem:[%s1394_s11 + $0x18] sm:$0xff]  }
 0x41d   :  { %v685_v38 = vsel %vm675_vm4, %v1320_v3, 0.0  ;;  %1037 = vmatpush3.bf16.msra.mxu1 %v1053_v32 }
 0x41e   :  { %1038 = vmatprep.subr.bf16.mxu1 %v1054_v33 }
 0x421   :  { %1039 = vmatpush3.bf16.msra.mxu1 %v1054_v33 }
 0x422   :  { %v621_v34 = vpop.trf.xlu0 }
 0x423   :  { %v1317_v35 = vadd.f32 %v621_v34, %v1203_v0  ;;  %v976_v34 = vld [vmem:[%s1393_s10] ss:$0 sm:$0xff] }
 0x425   :  { %v682_v1 = vsel %vm675_vm4, %v1317_v35, 0.0 }
 0x426   :  { %683 = vadd.xlane.f32.xlu1 %v682_v1 }
 0x42a   :  { %686 = vadd.xlane.f32.xlu1 %v685_v38 }
 0x4a2   :  { %v681_v39 = vpop.xlane.xlu0 %680 }
 0x4a3   :  { %v690_v40 = vmul.f32 0.0625, %v681_v39  ;;  %v678_v22 = vpop.xlane.xlu1 %677 }
 0x4a4   :  { %v689_v41 = vmul.f32 0.0625, %v678_v22 }
 0x4a5   :  { %v694_v42 = vsub.f32 %v1307_v26, %v690_v40 }
 0x4a6   :  { %v693_v0 = vsub.f32 %v1310_v28, %v689_v41 }
 0x4a7   :  { %v698_v44 = vmul.f32 %v694_v42, %v694_v42 }
 0x4a8   :  { %v697_v45 = vmul.f32 %v693_v0, %v693_v0 }
 0x4a9   :  { %v704_v2 = vsel %vm675_vm4, %v698_v44, 0.0 }
 0x4aa   :  { %705 = vadd.xlane.f32.xlu1 %v704_v2  ;;  %v701_v46 = vsel %vm675_vm4, %v697_v45, 0.0 }
 0x4ae   :  { %702 = vadd.xlane.f32.xlu1 %v701_v46 }
 0x4b3   :  { %v684_v47 = vpop.xlane.xlu1 %683 }
 0x4b4   :  { %v691_v31 = vmul.f32 0.0625, %v684_v47 }
 0x4b6   :  { %v695_v48 = vsub.f32 %v1317_v35, %v691_v31 }
 0x4b7   :  { %v687_v49 = vpop.xlane.xlu1 %686 }
 0x4b8   :  { %v692_v37 = vmul.f32 0.0625, %v687_v49  ;;  %v699_v51 = vmul.f32 %v695_v48, %v695_v48 }
 0x4ba   :  { %v696_v52 = vsub.f32 %v1320_v3, %v692_v37  ;;  %v707_v53 = vsel %vm675_vm4, %v699_v51, 0.0 }
 0x4bb   :  { %708 = vadd.xlane.f32.xlu0 %v707_v53 }
 0x4bc   :  { %v700_v54 = vmul.f32 %v696_v52, %v696_v52 }
 0x4be   :  { %v710_v55 = vsel %vm675_vm4, %v700_v54, 0.0 }
 0x4bf   :  { %711 = vadd.xlane.f32.xlu1 %v710_v55 }
 0x537   :  { %v706_v58 = vpop.xlane.xlu1 %705 }
 0x538   :  { %v714_v30 = vmul.f32 0.0625, %v706_v58 }
 0x53a   :  { %v718_v43 = vadd.f32 1e-05, %v714_v30 }
 0x53b   :  { %v703_v59 = vpop.xlane.xlu1 %702 }
 0x53c   :  { %1087 = vrsqrt.f32 %v718_v43  ;;  %v713_v60 = vmul.f32 0.0625, %v703_v59 }
 0x53e   :  { %v717_v61 = vadd.f32 1e-05, %v713_v60 }
 0x540   :  { %1089 = vrsqrt.f32 %v717_v61 }
 0x546   :  { %v1088_v62 = vpop.eup %1087 }
 0x547   :  { %v726_v63 = vmul.f32 %v1088_v62, %v694_v42 }
 0x548   :  { %v709_v50 = vpop.xlane.xlu0 %708 }
 0x549   :  { %v715_v4 = vmul.f32 0.0625, %v709_v50  ;;  %v736_v7 = vmul.f32 %v974_v36, %v726_v63  ;;  %v980_v63 = vld [vmem:[%s1395_s12] ss:$0 sm:$0xff]  ;;  %s1103_s12 = scalar_lea.vmem %s952_s3, 512 }
 0x54a   :  { %v1090_v5 = vpop.eup %1089  ;;  %p1104_p0 = scmp.ne.s32.totalorder %s952_s3, %s1103_s12  ;;  %p1109_p2 = scmp.lt.s32.totalorder %s1103_s12, %s1103_s12 }
 0x54b   :  { %v725_v56 = vmul.f32 %v1090_v5, %v693_v0  ;;  %v719_v6 = vadd.f32 1e-05, %v715_v4  ;;  %v746_v14 = vadd.f32 %v975_v9, %v736_v7 }
 0x54c   :  { %v712_v8 = vpop.xlane.xlu1 %711  ;;  %p1110_p3 = por %p1109_p2, %p1108_p1 }
 0x54d   :  { %1091 = vrsqrt.f32 %v719_v6  ;;  %v716_v10 = vmul.f32 0.0625, %v712_v8  ;;  %v735_v11 = vmul.f32 %v974_v36, %v725_v56 }
 0x54e   :  { %p1111_p4 = pnand %p1110_p3, %p1104_p0 }
 0x54f   :  { %v720_v12 = vadd.f32 1e-05, %v716_v10  ;;  %v745_v13 = vadd.f32 %v975_v9, %v735_v11 }
 0x551   :  { %1093 = vrsqrt.f32 %v720_v12  ;;  %v752_v15 = vpack.c.bf16 %v746_v14, %v745_v13 }
 0x553   :  { %1028 = vmatprep.mubr.msk.bf16.mxu0 %vm675_vm4, %v752_v15 }
 0x557   :  { %v1092_v16 = vpop.eup %1091 }
 0x558   :  { %v727_v17 = vmul.f32 %v1092_v16, %v695_v48 }
 0x55a   :  { %v737_v19 = vmul.f32 %v974_v36, %v727_v17 }
 0x55b   :  { %v1094_v18 = vpop.eup %1093 }
 0x55c   :  { %v728_v20 = vmul.f32 %v1094_v18, %v696_v52  ;;  %v747_v23 = vadd.f32 %v975_v9, %v737_v19 }
 0x55e   :  { %v738_v21 = vmul.f32 %v974_v36, %v728_v20 }
 0x560   :  { %v748_v24 = vadd.f32 %v975_v9, %v738_v21 }
 0x562   :  { %v753_v25 = vpack.c.bf16 %v748_v24, %v747_v23 }
 0x564   :  { %1029 = vmatmul.mubr.msk.bf16.vlgmr.msra.gmra.mrb[8].mxu0 %vm675_vm4, %v753_v25 }
 0x637   :  { %v1030_v1 = vpop.f32.mrb[8].mxu0 }
 0x638   :  { %v815_v38 = vadd.f32 %v1030_v1, %v976_v34  ;;  %v806_v39 = vpop.f32.mrb[9].mxu0 }
 0x639   :  { %v807_v40 = vadd.f32 %v976_v34, %v806_v39  ;;  %v1031_v22 = vpop.f32.mrb[10].mxu0 }
 0x63a   :  { %v827_v41 = vmul.f32 0.70710677, %v815_v38  ;;  %v818_v42 = vadd.f32 %v1031_v22, %v976_v34  ;;  %v809_v0 = vpop.f32.mrb[11].mxu0  ;;  %v823_v52 = vmul.f32 0.5, %v815_v38 }
 0x63b   :  { %v825_v44 = vmul.f32 0.70710677, %v807_v40  ;;  %v810_v2 = vadd.f32 %v976_v34, %v809_v0  ;;  %v821_v55 = vmul.f32 0.5, %v807_v40 }
 0x63c   :  { %1095 = verf.f32 %v827_v41  ;;  %v828_v45 = vmul.f32 0.70710677, %v818_v42  ;;  %v824_v53 = vmul.f32 0.5, %v818_v42 }
 0x63d   :  { %1097 = verf.f32 %v825_v44  ;;  %v826_v46 = vmul.f32 0.70710677, %v810_v2  ;;  %v822_v57 = vmul.f32 0.5, %v810_v2 }
 0x63e   :  { %1099 = verf.f32 %v828_v45 }
 0x63f   :  { %1101 = verf.f32 %v826_v46 }
 0x646   :  { %v1096_v47 = vpop.eup %1095 }
 0x647   :  { %v1098_v31 = vpop.eup %1097  ;;  %v835_v48 = vadd.f32 1.0, %v1096_v47 }
 0x648   :  { %v1100_v49 = vpop.eup %1099  ;;  %v833_v37 = vadd.f32 1.0, %v1098_v31 }
 0x649   :  { %v1102_v51 = vpop.eup %1101  ;;  %v836_v54 = vadd.f32 1.0, %v1100_v49  ;;  %v839_v30 = vmul.f32 %v835_v48, %v823_v52 }
 0x64a   :  { %v834_v58 = vadd.f32 1.0, %v1102_v51  ;;  %v837_v59 = vmul.f32 %v833_v37, %v821_v55 }
 0x64b   :  { %v840_v43 = vmul.f32 %v836_v54, %v824_v53 }
 0x64c   :  { %v838_v60 = vmul.f32 %v834_v58, %v822_v57 }
 0x64d   :  { %v851_v61 = vpack.c.bf16 %v840_v43, %v839_v30 }
 0x64e   :  { %v850_v62 = vpack.c.bf16 %v838_v60, %v837_v59 }
 0x650   :  { %1040 = vmatprep.mubr.msk.bf16.mxu1 %vm882_vm5, %v850_v62 }
 0x651   :  { %1041 = vmatmul.mubr.msk.bf16.vlgmr.msra.gmra.mrb[8].mxu1 %vm882_vm5, %v851_v61 }
 0x724   :  { %v1042_v36 = vpop.f32.mrb[8].mxu1 }
 0x725   :  { %v932_v50 = vadd.f32 %v1042_v36, %v980_v63  ;;  %v923_v4 = vpop.f32.mrb[9].mxu1 }
 0x726   :  { %v924_v5 = vadd.f32 %v980_v63, %v923_v4  ;;  %v1043_v56 = vpop.f32.mrb[10].mxu1 }
 0x727   :  { %v940_v6 = vadd.f32 %v932_v50, %v1317_v35  ;;  %v935_v7 = vadd.f32 %v1043_v56, %v980_v63  ;;  %v926_v8 = vpop.f32.mrb[11].mxu1 }
 0x728   :  { %v938_v9 = vadd.f32 %v924_v5, %v1310_v28  ;;  %v927_v10 = vadd.f32 %v980_v63, %v926_v8 }
 0x729   :  { %944 = vst.msk [vmem:[#allocation2 + $0x10] sm:$0xff] %vm675_vm4, %v940_v6  ;;  %v941_v11 = vadd.f32 %v935_v7, %v1320_v3 }
 0x72a   :  { %942 = vst.msk [vmem:[#allocation2] sm:$0xff] %vm675_vm4, %v938_v9  ;;  %v939_v12 = vadd.f32 %v927_v10, %v1307_v26 }
 0x72b   :  { %945 = vst.msk [vmem:[#allocation2 + $0x18] sm:$0xff] %vm675_vm4, %v941_v11 }
 0x72c   :  { %943 = vst.msk [vmem:[#allocation2 + $0x8] sm:$0xff] %vm675_vm4, %v939_v12 }
 0x72d   :  { %1114 = shalt.err (!%p1111_p4)
}
 0x72e   :  { %s1115_s19 = scalar_lea.hbm %s1396_s13, 512 }
 0x72f   :  { %p1116_p5 = scmp.ne.s32.totalorder %s1396_s13, %s1115_s19  ;;  %p1119_p6 = scmp.lt.u32.totalorder %s1115_s19, %s1396_s13 }
 0x731   :  { %p1121_p7 = pnand %p1119_p6, %p1116_p5 }
 0x733   :  { %1124 = shalt.err (!%p1121_p7)
}
 0x734   :  { %s1128_s4 = smov 128   ;;  %s1129_s5 = smov 8  }
 0x735   :  { %957 = dma.vmem_to_hbm [thread:$0]  %s952_s3, 512, %s1396_s13, [#allocation3], %s1128_s4, %s1128_s4, %s1129_s5  }
 0x736   :  { %1125 = dma.done.wait [#allocation3], 512  }
 0x737   :  { %1126 = vsyncadd [#allocation3], 4294966784 }
 0x738   :  { %961 = vsyncpa [#allocation3], 1 }

</bundles_post_ra>
